<compile_context>
chip_gen: v6e
topology: v6e:2x2x1
jax: 0.10.0
libtpu: 0.0.40
codegen_flags: <defaults>
</compile_context>

<pallas_src>
import functools

import jax
import jax.numpy as jnp
from jax import lax
from jax.experimental import pallas as pl
from jax.experimental.pallas import tpu as pltpu

LANES = 128
SUBLANES = 8
MAX_TILE_ROWS = 8192   # (8192, 128) f32 = 4 MiB per stream per buffer
CHUNK_ROWS = 64        # in-kernel working-set granularity (8 vregs / operand)


def _bce_kernel(x_ref, y_ref, o_ref, *, n_elems, tile_rows, chunk_rows,
                num_chunks, leftover_rows, steps_per_core, needs_mask):
    """Stable BCE-with-logits partial sums over one (tile_rows, 128) block.

    loss(x, y) = max(x, 0) - x*y + log1p(exp(-|x|))
    Grid: (core_split, steps_per_core).  Axis 1 is the reduction axis; the
    (8, 128) output block for core `c` is the resident accumulator.
    """
    c = pl.program_id(0)
    i = pl.program_id(1)

    @pl.when(i == 0)
    def _():
        o_ref[...] = jnp.zeros_like(o_ref)

    # Un-clamped step id: phantom steps (uneven core split) and ragged tail
    # rows end up with global indices >= n_elems and are masked to zero.
    step_id = c * steps_per_core + i
    row_start = step_id * tile_rows
    full_rows = n_elems // LANES     # static
    rem = n_elems % LANES            # static

    def chunk_sum(r0, nrows):
        x = x_ref[pl.ds(r0, nrows), :].astype(jnp.float32)
        y = y_ref[pl.ds(r0, nrows), :].astype(jnp.float32)
        per = jnp.maximum(x, 0.0) - x * y + jnp.log1p(jnp.exp(-jnp.abs(x)))
        if needs_mask:
            grow = row_start + r0 + lax.broadcasted_iota(
                jnp.int32, (nrows, LANES), 0)
            col = lax.broadcasted_iota(jnp.int32, (nrows, LANES), 1)
            valid = (grow < full_rows) | ((grow == full_rows) & (col < rem))
            per = jnp.where(valid, per, 0.0)    # NaN-safe for garbage tails
        # Fold (nrows, 128) -> (8, 128) with pure VPU adds (vreg-wise sum).
        return jnp.sum(per.reshape(nrows // SUBLANES, SUBLANES, LANES), axis=0)

    acc = jnp.zeros((SUBLANES, LANES), jnp.float32)
    if num_chunks == 1:
        acc = acc + chunk_sum(0, chunk_rows)
    else:
        def body(k, a):
            r0 = pl.multiple_of(k * chunk_rows, chunk_rows)
            return a + chunk_sum(r0, chunk_rows)
        acc = lax.fori_loop(0, num_chunks, body, acc, unroll=2)
    if leftover_rows:
        acc = acc + chunk_sum(num_chunks * chunk_rows, leftover_rows)

    o_ref[...] += acc


def bce_loss_2d(logits, labels):
    """Equivalent of BCELoss2d.forward: mean BCE-with-logits over all elems."""
    assert logits.shape == labels.shape
    n_elems = logits.size

    x = logits.reshape(-1)   # native dtype; upcast happens per-chunk in-kernel
    y = labels.reshape(-1)

    # Lane-dense (rows, 128) layout.  Only a tiny (< 8*128 elem) alignment
    # pad is ever materialized; large ragged shapes are handled purely by
    # in-kernel masking of the partial last grid block (no HBM copy).
    lane_pad = (-n_elems) % LANES
    rows = (n_elems + lane_pad) // LANES
    row_pad = ((-rows) % SUBLANES) if rows < MAX_TILE_ROWS else 0
    total_pad = lane_pad + row_pad * LANES
    if total_pad:
        x = jnp.pad(x, (0, total_pad))
        y = jnp.pad(y, (0, total_pad))
    rows += row_pad

    tile_rows = MAX_TILE_ROWS if rows >= MAX_TILE_ROWS else rows
    chunk_rows = min(CHUNK_ROWS, tile_rows)
    num_chunks = tile_rows // chunk_rows
    leftover_rows = tile_rows - num_chunks * chunk_rows   # multiple of 8

    x2 = x.reshape(rows, LANES)
    y2 = y.reshape(rows, LANES)

    steps_total = -(-rows // tile_rows)
    # Split the reduction across 2 TensorCores when there is enough work
    # (v7x megacore); on 1-TC chips this is a serial outer loop of size <= 2.
    core_split = 2 if steps_total >= 2 else 1
    steps_per_core = -(-steps_total // core_split)

    aligned = (total_pad == 0
               and rows % tile_rows == 0
               and steps_total % core_split == 0)
    needs_mask = not aligned

    if core_split * steps_per_core == steps_total:
        in_map = lambda c, i: (c * steps_per_core + i, 0)
    else:
        last_block = steps_total - 1  # clamp phantom steps; masked in-kernel
        in_map = lambda c, i: (jnp.minimum(c * steps_per_core + i, last_block), 0)

    kernel = functools.partial(
        _bce_kernel, n_elems=n_elems, tile_rows=tile_rows,
        chunk_rows=chunk_rows, num_chunks=num_chunks,
        leftover_rows=leftover_rows, steps_per_core=steps_per_core,
        needs_mask=needs_mask)

    partials = pl.pallas_call(
        kernel,
        out_shape=jax.ShapeDtypeStruct((core_split * SUBLANES, LANES),
                                       jnp.float32),
        grid_spec=pltpu.PrefetchScalarGridSpec(
            num_scalar_prefetch=0,
            grid=(core_split, steps_per_core),
            in_specs=[
                pl.BlockSpec((tile_rows, LANES), in_map),
                pl.BlockSpec((tile_rows, LANES), in_map),
            ],
            out_specs=pl.BlockSpec((SUBLANES, LANES), lambda c, i: (c, 0)),
        ),
        compiler_params=pltpu.CompilerParams(
            # TODO(synk): switch the first axis to pltpu.CORE_PARALLEL on v7x
            # once per-chip TensorCore-count detection is wired up.
            dimension_semantics=("parallel", "arbitrary"),
            vmem_limit_bytes=64 * 1024 * 1024,
        ),
    )(x2, y2)

    # Tiny epilogue on the XLA side: cross-lane reduce of (core_split*8, 128)
    # partials and the 1/N scale.
    return jnp.sum(partials) / n_elems


if __name__ == "__main__":
    key = jax.random.PRNGKey(0)
    k1, k2 = jax.random.split(key)

    # NCHW inputs, consistent with a 2D segmentation loss.
    N, C, H, W = 2, 4, 16, 16
    logits = jax.random.normal(k1, (N, C, H, W), dtype=jnp.float32)
    labels = (jax.random.uniform(k2, (N, C, H, W)) > 0.5).astype(jnp.float32)

    loss = bce_loss_2d(logits, labels)
    jax.block_until_ready(loss)

    # Pure-JAX reference check (numerically stable BCE-with-logits, mean).
    xr = logits.reshape(-1).astype(jnp.float32)
    yr = labels.reshape(-1).astype(jnp.float32)
    ref = jnp.mean(jnp.maximum(xr, 0.0) - xr * yr
                   + jnp.log1p(jnp.exp(-jnp.abs(xr))))
    assert jnp.allclose(loss, ref, rtol=1e-5, atol=1e-5), (loss, ref)

    print("KERNEL_OK")
</pallas_src>

<mosaic_0001>
module attributes {stable_mosaic.version = 11 : i64} {
  func.func @_bce_kernel(%arg0: i32, %arg1: i32, %arg2: memref<16x128xf32, #tpu.memory_space<vmem>>, %arg3: memref<16x128xf32, #tpu.memory_space<vmem>>, %arg4: memref<8x128xf32, #tpu.memory_space<vmem>>) attributes {dimension_semantics = [#tpu.dimension_semantics<parallel>, #tpu.dimension_semantics<arbitrary>], iteration_bounds = array<i64: 1, 1>, scalar_prefetch = 0 : i64, scratch_operands = 0 : i64, tpu.core_type = #tpu.core_type<tc>, window_params = [{transform_indices = @transform_0, window_bounds = array<i64: 16, 128>}, {transform_indices = @transform_1, window_bounds = array<i64: 16, 128>}, {transform_indices = @transform_2, window_bounds = array<i64: 8, 128>}]} {
    %c0_i32 = arith.constant 0 : i32
    %0 = arith.cmpi eq, %arg1, %c0_i32 : i32
    %1 = arith.extui %0 : i1 to i32
    %c0_i32_0 = arith.constant 0 : i32
    %2 = arith.cmpi ne, %1, %c0_i32_0 : i32
    scf.if %2 {
      %cst_11 = arith.constant 0.000000e+00 : f32
      %22 = vector.broadcast %cst_11 : f32 to vector<8x128xf32>
      %c0_12 = arith.constant 0 : index
      %c0_13 = arith.constant 0 : index
      %23 = vector.load %arg4[%c0_12, %c0_13] : memref<8x128xf32, #tpu.memory_space<vmem>>, vector<8x128xf32>
      tpu.vector_store %arg4[%c0_12, %c0_13], %22 {strides = array<i32>} : memref<8x128xf32, #tpu.memory_space<vmem>>, vector<8x128xf32>,
    } else {
    }
    %cst = arith.constant 0.000000e+00 : f32
    %3 = vector.broadcast %cst : f32 to vector<8x128xf32>
    %c0 = arith.constant 0 : index
    %c0_1 = arith.constant 0 : index
    %4 = vector.load %arg2[%c0, %c0_1] : memref<16x128xf32, #tpu.memory_space<vmem>>, vector<16x128xf32>
    %c0_2 = arith.constant 0 : index
    %c0_3 = arith.constant 0 : index
    %5 = vector.load %arg3[%c0_2, %c0_3] : memref<16x128xf32, #tpu.memory_space<vmem>>, vector<16x128xf32>
    %cst_4 = arith.constant 0.000000e+00 : f32
    %6 = vector.broadcast %cst_4 : f32 to vector<16x128xf32>
    %7 = arith.maximumf %4, %6 : vector<16x128xf32>
    %8 = arith.mulf %4, %5 : vector<16x128xf32>
    %9 = arith.subf %7, %8 : vector<16x128xf32>
    %10 = math.absf %4 : vector<16x128xf32>
    %cst_5 = arith.constant 0.000000e+00 : f32
    %11 = vector.broadcast %cst_5 : f32 to vector<16x128xf32>
    %12 = arith.subf %11, %10 : vector<16x128xf32>
    %13 = math.exp %12 : vector<16x128xf32>
    %14 = math.log1p %13 : vector<16x128xf32>
    %15 = arith.addf %9, %14 : vector<16x128xf32>
    %16 = vector.shape_cast %15 : vector<16x128xf32> to vector<2x8x128xf32>
    %cst_6 = arith.constant dense<0.000000e+00> : vector<8x128xf32>
    %17 = vector.multi_reduction <add>, %16, %cst_6 [0] : vector<2x8x128xf32> to vector<8x128xf32>
    %18 = arith.addf %3, %17 : vector<8x128xf32>
    %c0_7 = arith.constant 0 : index
    %c0_8 = arith.constant 0 : index
    %19 = vector.load %arg4[%c0_7, %c0_8] : memref<8x128xf32, #tpu.memory_space<vmem>>, vector<8x128xf32>
    %20 = arith.addf %19, %18 : vector<8x128xf32>
    %c0_9 = arith.constant 0 : index
    %c0_10 = arith.constant 0 : index
    %21 = vector.load %arg4[%c0_9, %c0_10] : memref<8x128xf32, #tpu.memory_space<vmem>>, vector<8x128xf32>
    tpu.vector_store %arg4[%c0_9, %c0_10], %20 {strides = array<i32>} : memref<8x128xf32, #tpu.memory_space<vmem>>, vector<8x128xf32>,
    return
  }
  func.func @transform_0(%arg0: i32, %arg1: i32) -> (i32, i32) {
    %c1_i32 = arith.constant 1 : i32
    %0 = arith.muli %arg0, %c1_i32 : i32
    %1 = arith.addi %0, %arg1 : i32
    %c0_i32 = arith.constant 0 : i32
    %c0_i32_0 = arith.constant 0 : i32
    return %1, %c0_i32 : i32, i32
  }
  func.func @transform_1(%arg0: i32, %arg1: i32) -> (i32, i32) {
    %c1_i32 = arith.constant 1 : i32
    %0 = arith.muli %arg0, %c1_i32 : i32
    %1 = arith.addi %0, %arg1 : i32
    %c0_i32 = arith.constant 0 : i32
    %c0_i32_0 = arith.constant 0 : i32
    return %1, %c0_i32 : i32, i32
  }
  func.func @transform_2(%arg0: i32, %arg1: i32) -> (i32, i32) {
    %c0_i32 = arith.constant 0 : i32
    %c0_i32_0 = arith.constant 0 : i32
    return %arg0, %c0_i32 : i32, i32
  }
}

</mosaic_0001>

<bundles_post_ra>
// kernel: tpu_custom_call.1
= control target key start
LH: loop header
LB: loop body
LE: loop exit
PB: predicated region body
PF: predicated region fallthrough
CT: control target
= control target key end

     0   :  { %7 = vsyncpa [#allocation3], 0  ;;  %s225_s0 = inlined_call_operand.hbm [shape: f32[16,128], index: 0, kind: input, shape index: {}]   ;;  %s226_s1 = inlined_call_operand.hbm [shape: f32[16,128], index: 1, kind: input, shape index: {}]   ;;  %s227_s2 = inlined_call_operand.hbm [shape: f32[8,128], index: 2, kind: output, shape index: {}]  }
   0x1   :  { %8 = vsyncpa [#allocation6], 0 }
   0x2   :  { %9 = vsyncpa [#allocation4], 0  ;;  %s196_s9 = smov [#allocation2]  }
   0x3   :  { %s19_s10 = sshll.u32 %s196_s9, 4  ;;  %s20_s10 = int_to_ptr.vmem [resolvable:$true] %s19_s10 }
   0x4   :  { %s138_s11 = scalar_lea.vmem %s20_s10, 256  ;;  %p143_p1 = scmp.lt.s32.totalorder %s20_s10, %s20_s10 }
   0x5   :  { %p139_p0 = scmp.ne.s32.totalorder %s20_s10, %s138_s11  ;;  %p144_p2 = scmp.lt.s32.totalorder %s138_s11, %s138_s11 }
   0x7   :  { %p145_p3 = por %p144_p2, %p143_p1 }
   0x9   :  { %p146_p4 = pnand %p145_p3, %p139_p0 }
   0xb   :  { %149 = shalt.err (!%p146_p4)
}
   0xc   :  { %s197_s12 = smov 128   ;;  %s198_s13 = smov 8  }
   0xd   :  { %25 = dma.hbm_to_vmem [thread:$0]  %s225_s0, 256, %s20_s10, [#allocation3], %s197_s12, %s197_s12, %s198_s13  }
   0xe   :  { %s199_s16 = smov [#allocation5]  }
   0xf   :  { %s35_s17 = sshll.u32 %s199_s16, 4  ;;  %s36_s17 = int_to_ptr.vmem [resolvable:$true] %s35_s17 }
  0x10   :  { %s158_s18 = scalar_lea.vmem %s36_s17, 256  ;;  %p163_p6 = scmp.lt.s32.totalorder %s36_s17, %s36_s17 }
  0x11   :  { %p159_p5 = scmp.ne.s32.totalorder %s36_s17, %s158_s18  ;;  %p164_p7 = scmp.lt.s32.totalorder %s158_s18, %s158_s18 }
  0x13   :  { %p165_p8 = por %p164_p7, %p163_p6 }
  0x15   :  { %p166_p9 = pnand %p165_p8, %p159_p5 }
  0x17   :  { %169 = shalt.err (!%p166_p9)
}
  0x18   :  { %41 = dma.hbm_to_vmem [thread:$0]  %s226_s1, 256, %s36_s17, [#allocation6], %s197_s12, %s197_s12, %s198_s13  }
  0x19   :  { %190 = dma.done.wait [#allocation3], 256  }
  0x1a   :  { %191 = vsyncadd [#allocation3], 4294967040 }
  0x1b   :  { %192 = dma.done.wait [#allocation6], 256  }
  0x1c   :  { %193 = vsyncadd [#allocation6], 4294967040  ;;  %v57_v0 = vld [vmem:[#allocation2] sm:$0xff]  ;;  %v58_v1 = vld [vmem:[#allocation2 + $0x8] sm:$0xff]  ;;  %s200_s0 = smov [#allocation7]  }
  0x1d   :  { %v67_v2 = vand.u32 2147483647, %v57_v0  ;;  %v68_v3 = vand.u32 2147483647, %v58_v1  ;;  %v59_v14 = vld [vmem:[#allocation5] sm:$0xff]  ;;  %v60_v15 = vld [vmem:[#allocation5 + $0x8] sm:$0xff] }
  0x1e   :  { %v61_v17 = vmax.f32 %v57_v0, 0.0  ;;  %v63_v18 = vmul.f32 %v59_v14, %v57_v0  ;;  %v62_v21 = vmax.f32 %v58_v1, 0.0  ;;  %v64_v22 = vmul.f32 %v60_v15, %v58_v1  ;;  %s106_s1 = sshll.u32 %s200_s0, 4  ;;  %s107_s1 = int_to_ptr.vmem [resolvable:$true] %s106_s1 }
  0x1f   :  { %v69_v4 = vsub.f32 0.0, %v67_v2  ;;  %v70_v5 = vsub.f32 0.0, %v68_v3  ;;  %s170_s21 = scalar_lea.vmem %s107_s1, 128  ;;  %p175_p11 = scmp.lt.s32.totalorder %s107_s1, %s107_s1 }
  0x20   :  { %v65_v26 = vsub.f32 %v61_v17, %v63_v18  ;;  %v66_v29 = vsub.f32 %v62_v21, %v64_v22  ;;  %p171_p10 = scmp.ne.s32.totalorder %s107_s1, %s170_s21  ;;  %p176_p12 = scmp.lt.s32.totalorder %s170_s21, %s170_s21 }
  0x21   :  { %v71_v6 = vmul.f32 1.442695, %v69_v4  ;;  %v73_v7 = vmul.f32 1.442695, %v70_v5 }
  0x22   :  { %p177_p13 = por %p176_p12, %p175_p11 }
  0x23   :  { %122 = vpow2.f32 %v71_v6 }
  0x24   :  { %124 = vpow2.f32 %v73_v7  ;;  %p178_p0 = pnand %p177_p13, %p171_p10 }
  0x30   :  { %v123_v8 = vpop.eup %122 }
  0x31   :  { %v125_v9 = vpop.eup %124  ;;  %v75_v10 = vadd.f32 1.0, %v123_v8  ;;  %v78_v12 = vmul.f32 -0.5, %v123_v8  ;;  %v81_v19 = vand.u32 2147483647, %v123_v8 }
  0x32   :  { %v84_v11 = vadd.f32 1.0, %v125_v9  ;;  %v87_v13 = vmul.f32 -0.5, %v125_v9  ;;  %v90_v23 = vand.u32 2147483647, %v125_v9 }
  0x33   :  { %126 = vlog2.f32 %v75_v10  ;;  %v79_v16 = vadd.f32 1.0, %v78_v12  ;;  %vm82_vm0 = vcmp.lt.f32.partialorder %v81_v19, 0.0004427343 }
  0x34   :  { %128 = vlog2.f32 %v84_v11  ;;  %v88_v20 = vadd.f32 1.0, %v87_v13  ;;  %vm91_vm1 = vcmp.lt.f32.partialorder %v90_v23, 0.0004427343 }
  0x35   :  { %v80_v24 = vmul.f32 %v123_v8, %v79_v16 }
  0x36   :  { %v89_v27 = vmul.f32 %v125_v9, %v88_v20 }
  0x40   :  { %v127_v25 = vpop.eup %126 }
  0x41   :  { %v129_v28 = vpop.eup %128  ;;  %v77_v30 = vmul.f32 0.6931472, %v127_v25 }
  0x42   :  { %v86_v31 = vmul.f32 0.6931472, %v129_v28 }
  0x43   :  { %v83_v32 = vsel %vm82_vm0, %v80_v24, %v77_v30 }
  0x44   :  { %v92_v33 = vsel %vm91_vm1, %v89_v27, %v86_v31  ;;  %v93_v34 = vadd.f32 %v83_v32, %v65_v26 }
  0x45   :  { %v94_v35 = vadd.f32 %v92_v33, %v66_v29 }
  0x47   :  { %v95_v36 = vadd.f32 %v94_v35, %v93_v34 }
  0x49   :  { %99 = vst [vmem:[#allocation7] sm:$0xff] %v95_v36 }
  0x4a   :  { %181 = shalt.err (!%p178_p0)
}
  0x4b   :  { %109 = dma.vmem_to_hbm [thread:$0]  %s107_s1, 128, %s227_s2, [#allocation4]  }
  0x4c   :  { %194 = dma.done.wait [#allocation4], 128  }
  0x4d   :  { %195 = vsyncadd [#allocation4], 4294967168 }
  0x4e   :  { %113 = vsyncpa [#allocation3], 1 }
  0x4f   :  { %114 = vsyncpa [#allocation6], 1 }
  0x50   :  { %115 = vsyncpa [#allocation4], 1 }

</bundles_post_ra>
